<compile_context>
chip_gen: v7x
topology: tpu7x:2x2x1
jax: 0.10.0
libtpu: 0.0.40
codegen_flags: <defaults>
</compile_context>

<pallas_src>
import functools

import jax
import jax.numpy as jnp
from jax.experimental import pallas as pl
from jax.experimental.pallas import tpu as pltpu


# ---------------------------------------------------------------------------
# Kernel
# ---------------------------------------------------------------------------
def _mlp_kernel(x_ref, w1_ref, b1_ref, w2_ref, b2_ref,
                w3_ref, b3_ref, w4_ref, b4_ref, o_ref):
    # Layer 1: [tile_b, S] @ [S, 256]  (bf16 x bf16 -> f32 accum)
    h = jnp.dot(x_ref[...], w1_ref[...],
                preferred_element_type=jnp.float32) + b1_ref[...]
    h = jnp.maximum(h, 0.0)

    # Layer 2: [tile_b, 256] @ [256, 128]
    h = jnp.dot(h.astype(w2_ref.dtype), w2_ref[...],
                preferred_element_type=jnp.float32) + b2_ref[...]
    h = jnp.maximum(h, 0.0)

    # Layer 3: [tile_b, 128] @ [128, 128]  (64-wide layer zero-padded to 128)
    h = jnp.dot(h.astype(w3_ref.dtype), w3_ref[...],
                preferred_element_type=jnp.float32) + b3_ref[...]
    h = jnp.maximum(h, 0.0)

    # Layer 4: [tile_b, 128] @ [128, 128]  (action_space zero-padded to 128)
    y = jnp.dot(h.astype(w4_ref.dtype), w4_ref[...],
                preferred_element_type=jnp.float32) + b4_ref[...]

    o_ref[...] = y.astype(o_ref.dtype)   # lane-dense (tile_b, 128) store


# ---------------------------------------------------------------------------
# Helpers
# ---------------------------------------------------------------------------
def _round_up(n, m):
    return ((n + m - 1) // m) * m


def _pad_to(a, shape):
    pads = [(0, s - d) for d, s in zip(a.shape, shape)]
    return jnp.pad(a, pads)


def init_params(key, state_space, action_space):
    """Deterministic synthetic init (PyTorch-Linear-like uniform fan-in scaling).

    Weights stored [in, out] so the kernel computes y = x @ W + b
    (equivalent to PyTorch's x @ W.T with W [out, in]). Biases stored [1, out].
    """
    dims = [state_space, 256, 128, 64, action_space]
    params = []
    for i in range(4):
        key, kw, kb = jax.random.split(key, 3)
        bound = 1.0 / jnp.sqrt(dims[i])
        w = jax.random.uniform(kw, (dims[i], dims[i + 1]), jnp.float32,
                               minval=-bound, maxval=bound)
        b = jax.random.uniform(kb, (1, dims[i + 1]), jnp.float32,
                               minval=-bound, maxval=bound)
        params += [w, b]
    return tuple(params)


def prepare_params(params, weight_dtype=jnp.bfloat16):
    """Pad narrow dims to 128 lanes and cast weights to bf16 (biases stay f32)."""
    w1, b1, w2, b2, w3, b3, w4, b4 = params
    h3_pad = _round_up(w3.shape[1], 128)            # 64 -> 128
    act_pad = _round_up(max(w4.shape[1], 1), 128)   # action_space -> 128

    w3p = _pad_to(w3, (w3.shape[0], h3_pad))
    b3p = _pad_to(b3, (1, h3_pad))
    w4p = _pad_to(w4, (h3_pad, act_pad))
    b4p = _pad_to(b4, (1, act_pad))

    ws = [w.astype(weight_dtype) for w in (w1, w2, w3p, w4p)]
    bs = [b.astype(jnp.float32) for b in (b1, b2, b3p, b4p)]
    return (ws[0], bs[0], ws[1], bs[1], ws[2], bs[2], ws[3], bs[3])


# ---------------------------------------------------------------------------
# Forward wrapper
# ---------------------------------------------------------------------------
@functools.partial(jax.jit, static_argnames=("action_space", "tile_b"))
def q_net_forward(x, prepared, action_space, tile_b=256):
    """Fused MLP forward. x: [B, state_space] float32. Returns [B, action_space] f32."""
    w1, b1, w2, b2, w3, b3, w4, b4 = prepared
    B, S = x.shape
    act_pad = w4.shape[1]

    # Batch tile: MXU-sized (256) for big batches, shrink-to-fit for tiny ones.
    tile = min(tile_b, _round_up(B, 8))
    b_pad = _round_up(B, tile)

    xb = x.astype(w1.dtype)
    if b_pad != B:
        xb = jnp.pad(xb, ((0, b_pad - B), (0, 0)))

    def act_map(i):       # activation tiles walk the batch axis
        return (i, 0)

    def const_map(i):     # weights/biases stay resident across grid steps
        return (0, 0)

    in_specs = [pl.BlockSpec((tile, S), act_map)]
    for p in (w1, b1, w2, b2, w3, b3, w4, b4):
        in_specs.append(pl.BlockSpec(p.shape, const_map))
    out_spec = pl.BlockSpec((tile, act_pad), act_map)

    y = pl.pallas_call(
        _mlp_kernel,
        out_shape=jax.ShapeDtypeStruct((b_pad, act_pad), jnp.float32),
        grid=(b_pad // tile,),
        in_specs=in_specs,
        out_specs=out_spec,
        compiler_params=pltpu.CompilerParams(
            dimension_semantics=("parallel",)),
    )(xb, w1, b1, w2, b2, w3, b3, w4, b4)

    return y[:B, :action_space]


# ---------------------------------------------------------------------------
# References
# ---------------------------------------------------------------------------
def reference_forward_mixed(x, params, weight_dtype=jnp.bfloat16):
    """Same mixed precision as the kernel (bf16 matmul operands, f32 accum)."""
    w1, b1, w2, b2, w3, b3, w4, b4 = params
    cd = weight_dtype
    h = jnp.dot(x.astype(cd), w1.astype(cd),
                preferred_element_type=jnp.float32) + b1
    h = jnp.maximum(h, 0.0)
    h = jnp.dot(h.astype(cd), w2.astype(cd),
                preferred_element_type=jnp.float32) + b2
    h = jnp.maximum(h, 0.0)
    h = jnp.dot(h.astype(cd), w3.astype(cd),
                preferred_element_type=jnp.float32) + b3
    h = jnp.maximum(h, 0.0)
    return jnp.dot(h.astype(cd), w4.astype(cd),
                   preferred_element_type=jnp.float32) + b4


def reference_forward_f32(x, params):
    w1, b1, w2, b2, w3, b3, w4, b4 = params
    h = jnp.maximum(x @ w1 + b1, 0.0)
    h = jnp.maximum(h @ w2 + b2, 0.0)
    h = jnp.maximum(h @ w3 + b3, 0.0)
    return h @ w4 + b4


# TODO(synk): Q_net.sample_action's epsilon-greedy branch uses host-side Python
# `random`; it is control flow outside the forward pass and not kernelized.

if __name__ == "__main__":
    state_space = 16
    action_space = 4

    key = jax.random.PRNGKey(0)
    kx, kx2, kp = jax.random.split(key, 3)
    params = init_params(kp, state_space, action_space)
    prepared = prepare_params(params)

    # Case 1: small aligned batch.
    B = 8
    x = jax.random.normal(kx, (B, state_space), jnp.float32)
    y = jax.block_until_ready(q_net_forward(x, prepared, action_space))
    assert y.shape == (B, action_space)
    y_mixed = reference_forward_mixed(x, params)
    y_f32 = reference_forward_f32(x, params)
    assert jnp.allclose(y, y_mixed, atol=1e-3, rtol=1e-3), "mismatch vs bf16 reference"
    assert jnp.allclose(y, y_f32, atol=5e-2, rtol=5e-2), "mismatch vs f32 reference"

    # Case 2: ragged batch (exercises batch padding + tiled grid path).
    B2 = 20
    x2 = jax.random.normal(kx2, (B2, state_space), jnp.float32)
    y2 = jax.block_until_ready(q_net_forward(x2, prepared, action_space))
    assert y2.shape == (B2, action_space)
    y2_mixed = reference_forward_mixed(x2, params)
    assert jnp.allclose(y2, y2_mixed, atol=1e-3, rtol=1e-3), "ragged-batch mismatch"

    print("KERNEL_OK")
</pallas_src>

<mosaic_0001>
module attributes {stable_mosaic.version = 11 : i64} {
  func.func @_mlp_kernel(%arg0: i32, %arg1: memref<8x16xbf16, #tpu.memory_space<vmem>>, %arg2: memref<16x256xbf16, #tpu.memory_space<vmem>>, %arg3: memref<1x256xf32, #tpu.memory_space<vmem>>, %arg4: memref<256x128xbf16, #tpu.memory_space<vmem>>, %arg5: memref<1x128xf32, #tpu.memory_space<vmem>>, %arg6: memref<128x128xbf16, #tpu.memory_space<vmem>>, %arg7: memref<1x128xf32, #tpu.memory_space<vmem>>, %arg8: memref<128x128xbf16, #tpu.memory_space<vmem>>, %arg9: memref<1x128xf32, #tpu.memory_space<vmem>>, %arg10: memref<8x128xf32, #tpu.memory_space<vmem>>) attributes {dimension_semantics = [#tpu.dimension_semantics<parallel>], iteration_bounds = array<i64: 1>, scalar_prefetch = 0 : i64, scratch_operands = 0 : i64, tpu.core_type = #tpu.core_type<tc>, window_params = [{transform_indices = @transform_0, window_bounds = array<i64: 8, 16>}, {pipeline_mode = #tpu.pipeline_mode<synchronous>, transform_indices = @transform_1, window_bounds = array<i64: 16, 256>}, {pipeline_mode = #tpu.pipeline_mode<synchronous>, transform_indices = @transform_2, window_bounds = array<i64: 1, 256>}, {pipeline_mode = #tpu.pipeline_mode<synchronous>, transform_indices = @transform_3, window_bounds = array<i64: 256, 128>}, {pipeline_mode = #tpu.pipeline_mode<synchronous>, transform_indices = @transform_4, window_bounds = array<i64: 1, 128>}, {pipeline_mode = #tpu.pipeline_mode<synchronous>, transform_indices = @transform_5, window_bounds = array<i64: 128, 128>}, {pipeline_mode = #tpu.pipeline_mode<synchronous>, transform_indices = @transform_6, window_bounds = array<i64: 1, 128>}, {pipeline_mode = #tpu.pipeline_mode<synchronous>, transform_indices = @transform_7, window_bounds = array<i64: 128, 128>}, {pipeline_mode = #tpu.pipeline_mode<synchronous>, transform_indices = @transform_8, window_bounds = array<i64: 1, 128>}, {transform_indices = @transform_9, window_bounds = array<i64: 8, 128>}]} {
    %c0 = arith.constant 0 : index
    %c0_0 = arith.constant 0 : index
    %0 = vector.load %arg1[%c0, %c0_0] : memref<8x16xbf16, #tpu.memory_space<vmem>>, vector<8x16xbf16>
    %c0_1 = arith.constant 0 : index
    %c0_2 = arith.constant 0 : index
    %1 = vector.load %arg2[%c0_1, %c0_2] : memref<16x256xbf16, #tpu.memory_space<vmem>>, vector<16x256xbf16>
    %cst = arith.constant dense<0.000000e+00> : vector<8x256xf32>
    %2 = tpu.matmul %0, %1, %cst {dimension_numbers = #tpu.dot_dimension_numbers<[1], [0], [0], [1], [0, 0, 1, 1], [], []>} : vector<8x16xbf16>, vector<16x256xbf16>, vector<8x256xf32> -> vector<8x256xf32>
    %c0_3 = arith.constant 0 : index
    %c0_4 = arith.constant 0 : index
    %3 = vector.load %arg3[%c0_3, %c0_4] : memref<1x256xf32, #tpu.memory_space<vmem>>, vector<1x256xf32>
    %4 = vector.broadcast %3 : vector<1x256xf32> to vector<8x256xf32>
    %5 = arith.addf %2, %4 : vector<8x256xf32>
    %cst_5 = arith.constant 0.000000e+00 : f32
    %6 = vector.broadcast %cst_5 : f32 to vector<8x256xf32>
    %7 = arith.maximumf %5, %6 : vector<8x256xf32>
    %8 = arith.truncf %7 : vector<8x256xf32> to vector<8x256xbf16>
    %c0_6 = arith.constant 0 : index
    %c0_7 = arith.constant 0 : index
    %9 = vector.load %arg4[%c0_6, %c0_7] : memref<256x128xbf16, #tpu.memory_space<vmem>>, vector<256x128xbf16>
    %cst_8 = arith.constant dense<0.000000e+00> : vector<8x128xf32>
    %10 = tpu.matmul %8, %9, %cst_8 {dimension_numbers = #tpu.dot_dimension_numbers<[1], [0], [0], [1], [0, 0, 1, 1], [], []>} : vector<8x256xbf16>, vector<256x128xbf16>, vector<8x128xf32> -> vector<8x128xf32>
    %c0_9 = arith.constant 0 : index
    %c0_10 = arith.constant 0 : index
    %11 = vector.load %arg5[%c0_9, %c0_10] : memref<1x128xf32, #tpu.memory_space<vmem>>, vector<1x128xf32>
    %12 = vector.broadcast %11 : vector<1x128xf32> to vector<8x128xf32>
    %13 = arith.addf %10, %12 : vector<8x128xf32>
    %cst_11 = arith.constant 0.000000e+00 : f32
    %14 = vector.broadcast %cst_11 : f32 to vector<8x128xf32>
    %15 = arith.maximumf %13, %14 : vector<8x128xf32>
    %16 = arith.truncf %15 : vector<8x128xf32> to vector<8x128xbf16>
    %c0_12 = arith.constant 0 : index
    %c0_13 = arith.constant 0 : index
    %17 = vector.load %arg6[%c0_12, %c0_13] : memref<128x128xbf16, #tpu.memory_space<vmem>>, vector<128x128xbf16>
    %cst_14 = arith.constant dense<0.000000e+00> : vector<8x128xf32>
    %18 = tpu.matmul %16, %17, %cst_14 {dimension_numbers = #tpu.dot_dimension_numbers<[1], [0], [0], [1], [0, 0, 1, 1], [], []>} : vector<8x128xbf16>, vector<128x128xbf16>, vector<8x128xf32> -> vector<8x128xf32>
    %c0_15 = arith.constant 0 : index
    %c0_16 = arith.constant 0 : index
    %19 = vector.load %arg7[%c0_15, %c0_16] : memref<1x128xf32, #tpu.memory_space<vmem>>, vector<1x128xf32>
    %20 = vector.broadcast %19 : vector<1x128xf32> to vector<8x128xf32>
    %21 = arith.addf %18, %20 : vector<8x128xf32>
    %cst_17 = arith.constant 0.000000e+00 : f32
    %22 = vector.broadcast %cst_17 : f32 to vector<8x128xf32>
    %23 = arith.maximumf %21, %22 : vector<8x128xf32>
    %24 = arith.truncf %23 : vector<8x128xf32> to vector<8x128xbf16>
    %c0_18 = arith.constant 0 : index
    %c0_19 = arith.constant 0 : index
    %25 = vector.load %arg8[%c0_18, %c0_19] : memref<128x128xbf16, #tpu.memory_space<vmem>>, vector<128x128xbf16>
    %cst_20 = arith.constant dense<0.000000e+00> : vector<8x128xf32>
    %26 = tpu.matmul %24, %25, %cst_20 {dimension_numbers = #tpu.dot_dimension_numbers<[1], [0], [0], [1], [0, 0, 1, 1], [], []>} : vector<8x128xbf16>, vector<128x128xbf16>, vector<8x128xf32> -> vector<8x128xf32>
    %c0_21 = arith.constant 0 : index
    %c0_22 = arith.constant 0 : index
    %27 = vector.load %arg9[%c0_21, %c0_22] : memref<1x128xf32, #tpu.memory_space<vmem>>, vector<1x128xf32>
    %28 = vector.broadcast %27 : vector<1x128xf32> to vector<8x128xf32>
    %29 = arith.addf %26, %28 : vector<8x128xf32>
    %c0_23 = arith.constant 0 : index
    %c0_24 = arith.constant 0 : index
    %30 = vector.load %arg10[%c0_23, %c0_24] : memref<8x128xf32, #tpu.memory_space<vmem>>, vector<8x128xf32>
    tpu.vector_store %arg10[%c0_23, %c0_24], %29 {strides = array<i32>} : memref<8x128xf32, #tpu.memory_space<vmem>>, vector<8x128xf32>,
    return
  }
  func.func @transform_0(%arg0: i32) -> (i32, i32) {
    %c0_i32 = arith.constant 0 : i32
    %c0_i32_0 = arith.constant 0 : i32
    return %arg0, %c0_i32 : i32, i32
  }
  func.func @transform_1(%arg0: i32) -> (i32, i32) {
    %c0_i32 = arith.constant 0 : i32
    %c0_i32_0 = arith.constant 0 : i32
    %c0_i32_1 = arith.constant 0 : i32
    return %c0_i32, %c0_i32_0 : i32, i32
  }
  func.func @transform_2(%arg0: i32) -> (i32, i32) {
    %c0_i32 = arith.constant 0 : i32
    %c0_i32_0 = arith.constant 0 : i32
    %c0_i32_1 = arith.constant 0 : i32
    return %c0_i32, %c0_i32_0 : i32, i32
  }
  func.func @transform_3(%arg0: i32) -> (i32, i32) {
    %c0_i32 = arith.constant 0 : i32
    %c0_i32_0 = arith.constant 0 : i32
    %c0_i32_1 = arith.constant 0 : i32
    return %c0_i32, %c0_i32_0 : i32, i32
  }
  func.func @transform_4(%arg0: i32) -> (i32, i32) {
    %c0_i32 = arith.constant 0 : i32
    %c0_i32_0 = arith.constant 0 : i32
    %c0_i32_1 = arith.constant 0 : i32
    return %c0_i32, %c0_i32_0 : i32, i32
  }
  func.func @transform_5(%arg0: i32) -> (i32, i32) {
    %c0_i32 = arith.constant 0 : i32
    %c0_i32_0 = arith.constant 0 : i32
    %c0_i32_1 = arith.constant 0 : i32
    return %c0_i32, %c0_i32_0 : i32, i32
  }
  func.func @transform_6(%arg0: i32) -> (i32, i32) {
    %c0_i32 = arith.constant 0 : i32
    %c0_i32_0 = arith.constant 0 : i32
    %c0_i32_1 = arith.constant 0 : i32
    return %c0_i32, %c0_i32_0 : i32, i32
  }
  func.func @transform_7(%arg0: i32) -> (i32, i32) {
    %c0_i32 = arith.constant 0 : i32
    %c0_i32_0 = arith.constant 0 : i32
    %c0_i32_1 = arith.constant 0 : i32
    return %c0_i32, %c0_i32_0 : i32, i32
  }
  func.func @transform_8(%arg0: i32) -> (i32, i32) {
    %c0_i32 = arith.constant 0 : i32
    %c0_i32_0 = arith.constant 0 : i32
    %c0_i32_1 = arith.constant 0 : i32
    return %c0_i32, %c0_i32_0 : i32, i32
  }
  func.func @transform_9(%arg0: i32) -> (i32, i32) {
    %c0_i32 = arith.constant 0 : i32
    %c0_i32_0 = arith.constant 0 : i32
    return %arg0, %c0_i32 : i32, i32
  }
}

</mosaic_0001>

<bundles_post_ra>
// kernel: q_net_forward.1
= control target key start
LH: loop header
LB: loop body
LE: loop exit
PB: predicated region body
PF: predicated region fallthrough
CT: control target
= control target key end

     0   :  { %14 = vsyncpa [#allocation3], 0  ;;  %s990_s0 = inlined_call_operand.vmem [shape: bf16[8,16], index: 0, kind: input, shape index: {}]   ;;  %s991_s1 = inlined_call_operand.hbm [shape: bf16[16,256], index: 1, kind: input, shape index: {}]   ;;  %s992_s2 = inlined_call_operand.vmem [shape: f32[1,256], index: 2, kind: input, shape index: {}]   ;;  %s993_s3 = inlined_call_operand.hbm [shape: bf16[256,128], index: 3, kind: input, shape index: {}]   ;;  %s994_s4 = inlined_call_operand.vmem [shape: f32[1,128], index: 4, kind: input, shape index: {}]   ;;  %s995_s5 = inlined_call_operand.hbm [shape: bf16[128,128], index: 5, kind: input, shape index: {}]   ;;  %s996_s6 = inlined_call_operand.vmem [shape: f32[1,128], index: 6, kind: input, shape index: {}]   ;;  %s997_s7 = inlined_call_operand.hbm [shape: bf16[128,128], index: 7, kind: input, shape index: {}]   ;;  %s998_s8 = inlined_call_operand.vmem [shape: f32[1,128], index: 8, kind: input, shape index: {}]   ;;  %s999_s9 = inlined_call_operand.vmem [shape: f32[8,128], index: 9, kind: output, shape index: {}]  }
   0x1   :  { %15 = vsyncpa [#allocation5], 0 }
   0x2   :  { %16 = vsyncpa [#allocation8], 0  ;;  %s829_s30 = smov [#allocation4]   ;;  %s735_s13 = scalar_lea.hbm %s993_s3, 2048 }
   0x3   :  { %s38_s10 = sshll.u32 %s829_s30, 4  ;;  %p736_p0 = scmp.ne.s32.totalorder %s993_s3, %s735_s13  ;;  %s39_s10 = int_to_ptr.vmem [resolvable:$true] %s38_s10 }
   0x4   :  { %p739_p1 = scmp.lt.u32.totalorder %s735_s13, %s993_s3 }
   0x6   :  { %p741_p2 = pnand %p739_p1, %p736_p0 }
   0x8   :  { %744 = shalt.err (!%p741_p2)
}
   0x9   :  { %s745_s18 = scalar_lea.vmem %s39_s10, 2048  ;;  %p750_p4 = scmp.lt.s32.totalorder %s39_s10, %s39_s10 }
   0xa   :  { %p746_p3 = scmp.ne.s32.totalorder %s39_s10, %s745_s18  ;;  %p751_p5 = scmp.lt.s32.totalorder %s745_s18, %s745_s18 }
   0xc   :  { %p752_p6 = por %p751_p5, %p750_p4 }
   0xe   :  { %p753_p7 = pnand %p752_p6, %p746_p3 }
  0x10   :  { %756 = shalt.err (!%p753_p7)
}
  0x11   :  { %s830_s19 = smov 64   ;;  %s831_s20 = smov 4  }
  0x12   :  { %44 = dma.hbm_to_vmem [thread:$0]  %s993_s3, 2048, %s39_s10, [#allocation5], %s830_s19, %s830_s19, %s831_s20  }
  0x13   :  { %s832_s23 = smov [#allocation2]   ;;  %s757_s27 = scalar_lea.hbm %s991_s1, 256 }
  0x14   :  { %s24_s24 = sshll.u32 %s832_s23, 4  ;;  %p758_p8 = scmp.ne.s32.totalorder %s991_s1, %s757_s27  ;;  %s25_s24 = int_to_ptr.vmem [resolvable:$true] %s24_s24 }
  0x15   :  { %p761_p9 = scmp.lt.u32.totalorder %s757_s27, %s991_s1 }
  0x17   :  { %p763_p10 = pnand %p761_p9, %p758_p8 }
  0x19   :  { %766 = shalt.err (!%p763_p10)
}
  0x1a   :  { %s767_s12 = scalar_lea.vmem %s25_s24, 256  ;;  %p772_p12 = scmp.lt.s32.totalorder %s25_s24, %s25_s24 }
  0x1b   :  { %p768_p11 = scmp.ne.s32.totalorder %s25_s24, %s767_s12  ;;  %p773_p13 = scmp.lt.s32.totalorder %s767_s12, %s767_s12 }
  0x1d   :  { %p774_p0 = por %p773_p13, %p772_p12 }
  0x1f   :  { %p775_p1 = pnand %p774_p0, %p768_p11 }
  0x21   :  { %778 = shalt.err (!%p775_p1)
}
  0x22   :  { %s833_s3 = smov 128   ;;  %s834_s10 = smov 8  }
  0x23   :  { %30 = dma.hbm_to_vmem [thread:$0]  %s991_s1, 256, %s25_s24, [#allocation3], %s833_s3, %s833_s3, %s834_s10  }
  0x24   :  { %s835_s15 = smov [#allocation6]   ;;  %s836_s17 = smov [#allocation7]  }
  0x25   :  { %s52_s16 = sshll.u32 %s835_s15, 4  ;;  %s66_s18 = sshll.u32 %s836_s17, 4  ;;  %s53_s16 = int_to_ptr.vmem [resolvable:$true] %s52_s16  ;;  %s917_s18 = int_to_ptr.vmem [resolvable:$true] %s66_s18 }
  0x26   :  { %s779_s23 = scalar_lea.hbm %s995_s5, 1024 }
  0x27   :  { %p780_p2 = scmp.ne.s32.totalorder %s995_s5, %s779_s23  ;;  %p783_p3 = scmp.lt.u32.totalorder %s779_s23, %s995_s5 }
  0x29   :  { %p785_p4 = pnand %p783_p3, %p780_p2 }
  0x2b   :  { %788 = shalt.err (!%p785_p4)
}
  0x2c   :  { %s789_s1 = scalar_lea.vmem %s53_s16, 1024  ;;  %p794_p6 = scmp.lt.s32.totalorder %s53_s16, %s53_s16 }
  0x2d   :  { %p790_p5 = scmp.ne.s32.totalorder %s53_s16, %s789_s1  ;;  %p795_p7 = scmp.lt.s32.totalorder %s789_s1, %s789_s1 }
  0x2f   :  { %p796_p8 = por %p795_p7, %p794_p6 }
  0x31   :  { %p797_p9 = pnand %p796_p8, %p790_p5 }
  0x33   :  { %800 = shalt.err (!%p797_p9)
}
  0x34   :  { %58 = dma.hbm_to_vmem [thread:$0]  %s995_s5, 1024, %s53_s16, [#allocation5], %s830_s19, %s830_s19, %s831_s20  }
  0x35   :  { %s801_s12 = scalar_lea.hbm %s997_s7, 1024 }
  0x36   :  { %p802_p10 = scmp.ne.s32.totalorder %s997_s7, %s801_s12  ;;  %p805_p11 = scmp.lt.u32.totalorder %s801_s12, %s997_s7 }
  0x38   :  { %p807_p12 = pnand %p805_p11, %p802_p10 }
  0x3a   :  { %810 = shalt.err (!%p807_p12)
}
  0x3b   :  { %s811_s15 = scalar_lea.vmem %s917_s18, 1024  ;;  %p816_p0 = scmp.lt.s32.totalorder %s917_s18, %s917_s18 }
  0x3c   :  { %p812_p13 = scmp.ne.s32.totalorder %s917_s18, %s811_s15  ;;  %p817_p1 = scmp.lt.s32.totalorder %s811_s15, %s811_s15 }
  0x3e   :  { %p818_p2 = por %p817_p1, %p816_p0 }
  0x40   :  { %p819_p3 = pnand %p818_p2, %p812_p13 }
  0x42   :  { %822 = shalt.err (!%p819_p3)
}
  0x43   :  { %72 = dma.hbm_to_vmem [thread:$0]  %s997_s7, 1024, %s917_s18, [#allocation8], %s830_s19, %s830_s19, %s831_s20  }
  0x44   :  { %823 = dma.done.wait [#allocation3], 256  }
  0x45   :  { %824 = vsyncadd [#allocation3], 4294967040 }
  0x46   :  { %825 = dma.done.wait [#allocation5], 3072  }
  0x47   :  { %826 = vsyncadd [#allocation5], 4294964224 }
  0x48   :  { %827 = dma.done.wait [#allocation8], 1024  }
  0x49   :  { %828 = vsyncadd [#allocation8], 4294966272  ;;  %v837_v0 = vmov 0   ;;  %v700_v1 = vld [vmem:[#allocation2 + $0x4] ss:$8 sps:$4 sm:$0xff]   ;;  %v703_v4 = vld [vmem:[#allocation4 + $0x40] sm:$0xff]   ;;  %v93_v27 = vlaneseq }
  0x4a   :  { %149 = vmatprep.mubr.bf16.mxu0 %v837_v0  ;;  %v702_v2 = vld [vmem:[#allocation2] ss:$8 sps:$4 sm:$0xff]   ;;  %117 = vmatprep.subr.bf16.mxu0 %v700_v1  ;;  %vm113_vm0 = vcmask 130048   ;;  %v704_v5 = vld [vmem:[#allocation4] sm:$0xff]   ;;  %v705_v6 = vld [vmem:[#allocation4 + $0x48] sm:$0xff]   ;;  %v838_v21 = vmov 0.0  }
  0x4b   :  { %v88_v3 = vld [vmem:[%s990_s0] sm:$0xf]  ;;  %118 = vmatpush1.bf16.msra.mxu0 %v702_v2  ;;  %609 = vmatprep.subr.bf16.mxu1 %v703_v4  ;;  %v706_v7 = vld [vmem:[#allocation4 + $0x8] sm:$0xff]   ;;  %v709_v10 = vld [vmem:[#allocation4 + $0x58] sm:$0xff]   ;;  %v94_v28 = vshrl.u32 %v93_v27, 7  ;;  %vm839_vm1 = vmmov 0  }
  0x4c   :  { %610 = vmatpush3.bf16.msra.mxu1 %v704_v5  ;;  %v707_v8 = vld [vmem:[#allocation4 + $0x50] sm:$0xff]   ;;  %v710_v11 = vld [vmem:[#allocation4 + $0x18] sm:$0xff]   ;;  %v711_v12 = vld [vmem:[#allocation4 + $0x60] sm:$0xff]   ;;  %649 = vmatprep.subr.bf16.mxu0 %v838_v21 }
  0x4d   :  { %611 = vmatprep.subr.bf16.mxu1 %v705_v6  ;;  %v708_v9 = vld [vmem:[#allocation4 + $0x10] sm:$0xff]   ;;  %v712_v13 = vld [vmem:[#allocation4 + $0x20] sm:$0xff]   ;;  %v713_v14 = vld [vmem:[#allocation4 + $0x68] sm:$0xff]   ;;  %v95_v29 = vsub.s32 0, %v94_v28  ;;  %v99_v31 = vsub.s32 1, %v94_v28 }
  0x4e   :  { %573 = vmatmul.mubr.msk.bf16.vlgmr.msra.gmra.mrb[0].mxu0 %vm113_vm0, %v88_v3  ;;  %v714_v15 = vld [vmem:[#allocation4 + $0x28] sm:$0xff]   ;;  %v715_v16 = vld [vmem:[#allocation4 + $0x70] sm:$0xff]   ;;  %v717_v18 = vld [vmem:[#allocation4 + $0x78] sm:$0xff]  }
  0x4f   :  { %v716_v17 = vld [vmem:[#allocation4 + $0x30] sm:$0xff]   ;;  %v718_v19 = vld [vmem:[#allocation4 + $0x38] sm:$0xff]   ;;  %v719_v20 = vld [vmem:[#allocation6] sm:$0xff]   ;;  %665 = vmatprep.mubr.msk.bf16.mxu0 %vm839_vm1, %v838_v21 }
  0x50   :  { %612 = vmatpush3.bf16.msra.mxu1 %v706_v7  ;;  %650 = vmatpush3.bf16.msra.mxu0 %v719_v20  ;;  %v720_v22 = vld [vmem:[#allocation6 + $0x8] sm:$0xff]   ;;  %v721_v23 = vld [vmem:[#allocation6 + $0x10] sm:$0xff]   ;;  %v722_v24 = vld [vmem:[#allocation6 + $0x18] sm:$0xff]  }
  0x51   :  { %613 = vmatprep.subr.bf16.mxu1 %v707_v8  ;;  %651 = vmatprep.subr.bf16.mxu0 %v838_v21  ;;  %v723_v25 = vld [vmem:[#allocation6 + $0x20] sm:$0xff]   ;;  %v724_v26 = vld [vmem:[#allocation6 + $0x28] sm:$0xff]   ;;  %v91_v30 = vld [vmem:[%s992_s2] sm:$0x3] }
  0x52   :  { %v96_v32 = vrot.slane %v91_v30, %v95_v29  ;;  %v100_v33 = vrot.slane %v91_v30, %v99_v31  ;;  %v725_v44 = vld [vmem:[#allocation6 + $0x30] sm:$0xff]   ;;  %v726_v45 = vld [vmem:[#allocation6 + $0x38] sm:$0xff]   ;;  %v727_v46 = vld [vmem:[#allocation7] sm:$0xff]  }
  0x53   :  { %v728_v47 = vld [vmem:[#allocation7 + $0x8] sm:$0xff]   ;;  %v729_v48 = vld [vmem:[#allocation7 + $0x10] sm:$0xff]   ;;  %v730_v49 = vld [vmem:[#allocation7 + $0x18] sm:$0xff]  }
  0x54   :  { %614 = vmatpush3.bf16.msra.mxu1 %v708_v9  ;;  %652 = vmatpush3.bf16.msra.mxu0 %v720_v22  ;;  %v731_v50 = vld [vmem:[#allocation7 + $0x20] sm:$0xff]   ;;  %v732_v51 = vld [vmem:[#allocation7 + $0x28] sm:$0xff]   ;;  %v574_v53 = vld [vmem:[%s994_s4] ss:$0 sm:$0xff] }
  0x55   :  { %615 = vmatprep.subr.bf16.mxu1 %v709_v10  ;;  %653 = vmatprep.subr.bf16.mxu0 %v838_v21  ;;  %v733_v61 = vld [vmem:[#allocation7 + $0x30] sm:$0xff]   ;;  %v734_v62 = vld [vmem:[#allocation7 + $0x38] sm:$0xff]  }
  0x56   :  { %v591_v63 = vld [vmem:[%s996_s6] ss:$0 sm:$0xff] }
  0x57   :  { %v600_v7 = vld [vmem:[%s998_s8] ss:$0 sm:$0xff] }
  0x58   :  { %616 = vmatpush3.bf16.msra.mxu1 %v710_v11  ;;  %654 = vmatpush3.bf16.msra.mxu0 %v721_v23 }
  0x59   :  { %617 = vmatprep.subr.bf16.mxu1 %v711_v12  ;;  %655 = vmatprep.subr.bf16.mxu0 %v838_v21 }
  0x5c   :  { %618 = vmatpush3.bf16.msra.mxu1 %v712_v13  ;;  %656 = vmatpush3.bf16.msra.mxu0 %v722_v24 }
  0x5d   :  { %619 = vmatprep.subr.bf16.mxu1 %v713_v14  ;;  %657 = vmatprep.subr.bf16.mxu0 %v838_v21 }
  0x60   :  { %620 = vmatpush3.bf16.msra.mxu1 %v714_v15  ;;  %658 = vmatpush3.bf16.msra.mxu0 %v723_v25 }
  0x61   :  { %621 = vmatprep.subr.bf16.mxu1 %v715_v16  ;;  %659 = vmatprep.subr.bf16.mxu0 %v838_v21 }
  0x64   :  { %622 = vmatpush3.bf16.msra.mxu1 %v716_v17  ;;  %660 = vmatpush3.bf16.msra.mxu0 %v724_v26 }
  0x65   :  { %623 = vmatprep.subr.bf16.mxu1 %v717_v18  ;;  %661 = vmatprep.subr.bf16.mxu0 %v838_v21 }
  0x68   :  { %624 = vmatpush3.bf16.msra.mxu1 %v718_v19  ;;  %662 = vmatpush3.bf16.msra.mxu0 %v725_v44 }
  0x69   :  { %669 = vmatprep.subr.bf16.mxu1 %v838_v21  ;;  %663 = vmatprep.subr.bf16.mxu0 %v838_v21 }
  0x6c   :  { %664 = vmatpush3.bf16.msra.mxu0 %v726_v45 }
 0x121   :  { %v151_v34 = vpop.f32.mrb[0].mxu0 }
 0x122   :  { %v152_v35 = vadd.f32 %v151_v34, %v96_v32  ;;  %v153_v36 = vpop.f32.mrb[1].mxu0 }
 0x123   :  { %v154_v37 = vadd.f32 %v153_v36, %v100_v33  ;;  %v155_v38 = vpop.f32.mrb[2].mxu0 }
 0x124   :  { %v158_v39 = vmax.f32 %v152_v35, 0.0  ;;  %v156_v40 = vpop.f32.mrb[3].mxu0 }
 0x125   :  { %v159_v41 = vmax.f32 %v154_v37, 0.0 }
 0x126   :  { %v160_v43 = vpack.c.bf16 %v158_v39, %v158_v39 }
 0x127   :  { %v161_v42 = vpack.c.bf16 %v159_v41, %v159_v41 }
 0x129   :  { %329 = vmatprep.mubr.bf16.mxu1 %v161_v42 }
 0x12a   :  { %330 = vmatmul.mubr.bf16.vlgmr.msra.gmra.mrb[0].mxu1 %v160_v43 }
 0x12b   :  { %685 = vmatprep.mubr.msk.bf16.mxu1 %vm839_vm1, %v838_v21  ;;  %670 = vmatpush3.bf16.msra.mxu1 %v727_v46 }
 0x12c   :  { %671 = vmatprep.subr.bf16.mxu1 %v838_v21 }
 0x12f   :  { %672 = vmatpush3.bf16.msra.mxu1 %v728_v47 }
 0x130   :  { %673 = vmatprep.subr.bf16.mxu1 %v838_v21 }
 0x133   :  { %674 = vmatpush3.bf16.msra.mxu1 %v729_v48 }
 0x134   :  { %675 = vmatprep.subr.bf16.mxu1 %v838_v21 }
 0x137   :  { %676 = vmatpush3.bf16.msra.mxu1 %v730_v49 }
 0x138   :  { %677 = vmatprep.subr.bf16.mxu1 %v838_v21 }
 0x13b   :  { %678 = vmatpush3.bf16.msra.mxu1 %v731_v50 }
 0x13c   :  { %679 = vmatprep.subr.bf16.mxu1 %v838_v21 }
 0x13f   :  { %680 = vmatpush3.bf16.msra.mxu1 %v732_v51 }
 0x140   :  { %681 = vmatprep.subr.bf16.mxu1 %v838_v21 }
 0x143   :  { %682 = vmatpush3.bf16.msra.mxu1 %v733_v61 }
 0x144   :  { %683 = vmatprep.subr.bf16.mxu1 %v838_v21 }
 0x147   :  { %684 = vmatpush3.bf16.msra.mxu1 %v734_v62 }
 0x1fd   :  { %v625_v52 = vpop.f32.mrb[0].mxu1 }
 0x1fe   :  { %v626_v54 = vpop.f32.mrb[1].mxu1 }
 0x1ff   :  { %v627_v55 = vadd.f32 %v626_v54, %v625_v52  ;;  %v628_v56 = vpop.f32.mrb[2].mxu1 }
 0x200   :  { %v629_v57 = vpop.f32.mrb[3].mxu1 }
 0x201   :  { %v332_v58 = vadd.f32 %v627_v55, %v574_v53 }
 0x203   :  { %v337_v59 = vmax.f32 %v332_v58, 0.0 }
 0x205   :  { %v338_v60 = vpack.c.bf16 %v337_v59, %v337_v59 }
 0x207   :  { %666 = vmatmul.mubr.bf16.vlgmr.msra.gmra.mrb[4].mxu0 %v338_v60 }
 0x2da   :  { %v444_v0 = vpop.f32.mrb[4].mxu0 }
 0x2db   :  { %v445_v1 = vadd.f32 %v591_v63, %v444_v0  ;;  %v667_v2 = vpop.f32.mrb[5].mxu0 }
 0x2dc   :  { %v447_v3 = vpop.f32.mrb[6].mxu0 }
 0x2dd   :  { %v450_v4 = vmax.f32 %v445_v1, 0.0  ;;  %v668_v5 = vpop.f32.mrb[7].mxu0 }
 0x2df   :  { %v451_v6 = vpack.c.bf16 %v450_v4, %v450_v4 }
 0x2e1   :  { %686 = vmatmul.mubr.bf16.vlgmr.msra.gmra.mrb[4].mxu1 %v451_v6 }
 0x3b4   :  { %v557_v8 = vpop.f32.mrb[4].mxu1 }
 0x3b5   :  { %v558_v9 = vadd.f32 %v600_v7, %v557_v8  ;;  %v687_v10 = vpop.f32.mrb[5].mxu1 }
 0x3b6   :  { %v560_v11 = vpop.f32.mrb[6].mxu1 }
 0x3b7   :  { %563 = vst [vmem:[%s999_s9] sm:$0xff] %v558_v9  ;;  %v688_v12 = vpop.f32.mrb[7].mxu1 }
 0x3b8   :  { %568 = vsyncpa [#allocation3], 1 }
 0x3b9   :  { %569 = vsyncpa [#allocation5], 1 }
 0x3ba   :  { %570 = vsyncpa [#allocation8], 1 }

</bundles_post_ra>
